<compile_context>
chip_gen: v6e
topology: v6e:2x2x1
jax: 0.10.0
libtpu: 0.0.40
codegen_flags: <defaults>
</compile_context>

<pallas_src>
import jax
import jax.numpy as jnp
from jax.experimental import pallas as pl
from jax.experimental.pallas import tpu as pltpu


# ----------------------------------------------------------------------------
# Kernel
# ----------------------------------------------------------------------------
def _rank3_kernel(m_ref, x_ref, y_ref, o_ref):
    """out[9i+3j+k, :] = 2.5*x[i,:]*y[3j+k,:] - sum_c M[9i+3j+k, c]*x[c,:].

    m_ref: (27, 3) VMEM  sym coefficients (already include the 0.5 factor)
    x_ref: (3, bn) VMEM  (component, batch-lane)
    y_ref: (9, bn) VMEM  (row 3*j+k, batch-lane)
    o_ref: (27, bn) VMEM (row 9*i+3*j+k, batch-lane)
    """
    x = x_ref[...]                        # (3, bn)
    y = y_ref[...]                        # (9, bn)
    m = m_ref[...]                        # (27, 3)

    x25 = 2.5 * x                         # fold the 5/2 factor once (3 rows)
    x0 = x[0:1, :]
    x1 = x[1:2, :]
    x2 = x[2:3, :]

    blocks = []
    for i in range(3):
        r0 = 9 * i
        mb = m[r0:r0 + 9, :]              # (9, 3) static slice of a tiny tile
        sym = (mb[:, 0:1] * x0            # (9,1)*(1,bn) -> (9,bn) broadcasts
               + mb[:, 1:2] * x1
               + mb[:, 2:3] * x2)
        # (1,bn) * (9,bn): sublane-broadcast of the prescaled x row i.
        blocks.append(x25[i:i + 1, :] * y - sym)

    # Assemble in-register and issue a single tile-aligned full store.
    o_ref[...] = jnp.concatenate(blocks, axis=0).astype(o_ref.dtype)


# ----------------------------------------------------------------------------
# Wrapper helpers
# ----------------------------------------------------------------------------
# Double-buffered per-step VMEM ~= 2*(32+64+128) B/lane = 448 B/lane
# (padded sublane tiles).  bn=16384 -> ~7.3 MiB, safe under v5e's 16 MiB
# default scoped-VMEM limit while moving ~2.5 MB HBM per grid step.
_BN_MAX = 16384


def _round_up(v, m):
    return (v + m - 1) // m * m


def _choose_bn(n):
    """Lane-tile size: large steps to amortize per-step pipeline overhead,
    but >= 2 grid steps whenever possible (v7x has 2 TensorCores)."""
    n128 = _round_up(max(int(n), 1), 128)
    if n128 <= 128:
        return 128                        # can't split below one lane tile
    return min(_BN_MAX, _round_up(pl.cdiv(n128, 2), 128))


def _sym_coeff(eye):
    """M (27,3): (M @ x)[9i+3j+k] = 0.5*(x_i*e_jk + x_j*e_ki + x_k*e_ij)."""
    e = eye.astype(jnp.float32)
    d = jnp.eye(3, dtype=jnp.float32)
    m = 0.5 * (jnp.einsum('im,jk->ijkm', d, e)
               + jnp.einsum('jm,ki->ijkm', d, e)
               + jnp.einsum('km,ij->ijkm', d, e))
    return m.reshape(27, 3)


def rank_three_channel_major(x_t, y_t, eye):
    """Relayout-free Pallas core.

    Args:
      x_t: (3, N)  channel-major unit vectors.
      y_t: (9, N)  channel-major y, row 3*j+k == y[:, j, k].
      eye: (3, 3).
    Returns:
      (27, N) channel-major output, row 9*i+3*j+k.
    """
    assert x_t.shape[0] == 3 and y_t.shape[0] == 9
    n = x_t.shape[1]
    dtype = x_t.dtype
    m = _sym_coeff(eye).astype(dtype)

    bn = _choose_bn(n)
    grid = (pl.cdiv(n, bn),)

    return pl.pallas_call(
        _rank3_kernel,
        out_shape=jax.ShapeDtypeStruct((27, n), dtype),
        grid=grid,
        in_specs=[
            pl.BlockSpec((27, 3), lambda b: (0, 0)),   # M: tiny, block-resident
            pl.BlockSpec((3, bn), lambda b: (0, b)),   # x_t lane tile
            pl.BlockSpec((9, bn), lambda b: (0, b)),   # y_t lane tile
        ],
        out_specs=pl.BlockSpec((27, bn), lambda b: (0, b)),
        compiler_params=pltpu.CompilerParams(
            dimension_semantics=("parallel",)),
    )(m, x_t, y_t)


@jax.jit
def rank_three_cartesian_harmonics(x, y, eye):
    """Drop-in equivalent of RankThreeCartesianHarmonics.forward.

    Args:
      x:   (N, 3)    unit vectors
      y:   (N, 3, 3) y = x (outer) x
      eye: (3, 3)    identity matrix
    Returns:
      (None, out) with out of shape (N, 3, 3, 3).

    Note: the transposes below are layout glue to match the PyTorch contract;
    bandwidth-sensitive callers should use rank_three_channel_major directly
    and keep the (C, N) layout end-to-end (the XLA relayouts here roughly
    triple HBM traffic vs. the kernel alone).
    """
    n = x.shape[0]
    x_t = x.T                      # (3, N)
    y_t = y.reshape(n, 9).T        # (9, N)
    out_t = rank_three_channel_major(x_t, y_t, eye)
    out = out_t.T.reshape(n, 3, 3, 3)
    return None, out


# ----------------------------------------------------------------------------
# Reference & demo
# ----------------------------------------------------------------------------
def _reference(x, y, eye):
    xe = jnp.einsum('ai,jk->aijk', x, eye)
    xe = xe + jnp.transpose(xe, (0, 2, 3, 1)) + jnp.transpose(xe, (0, 3, 1, 2))
    xy = jnp.einsum('ai,ajk->aijk', x, y)
    return (5.0 / 2.0) * (xy - (1.0 / 5.0) * xe)


if __name__ == "__main__":
    key = jax.random.PRNGKey(0)
    eye = jnp.eye(3, dtype=jnp.float32)

    # BATCH_SIZE=10 from the module; 200 and 1000 exercise ragged boundary
    # blocks and the multi-step ("parallel") grid.
    for n in (10, 200, 1000):
        kx, key = jax.random.split(key)
        raw = jax.random.normal(kx, (n, 3), dtype=jnp.float32)
        x = raw / jnp.linalg.norm(raw, axis=-1, keepdims=True)
        y = jnp.einsum('ai,aj->aij', x, x)

        none_out, out = rank_three_cartesian_harmonics(x, y, eye)
        out = jax.block_until_ready(out)

        assert none_out is None
        assert out.shape == (n, 3, 3, 3)
        ref = _reference(x, y, eye)
        assert jnp.allclose(out, ref, atol=1e-5, rtol=1e-5), "mismatch vs reference"

    print("KERNEL_OK")
</pallas_src>

<mosaic_0001>
module attributes {stable_mosaic.version = 11 : i64} {
  func.func @_rank3_kernel(%arg0: i32, %arg1: memref<27x3xf32, #tpu.memory_space<vmem>>, %arg2: memref<3x128xf32, #tpu.memory_space<vmem>>, %arg3: memref<9x128xf32, #tpu.memory_space<vmem>>, %arg4: memref<27x128xf32, #tpu.memory_space<vmem>>) attributes {dimension_semantics = [#tpu.dimension_semantics<parallel>], iteration_bounds = array<i64: 1>, scalar_prefetch = 0 : i64, scratch_operands = 0 : i64, tpu.core_type = #tpu.core_type<tc>, window_params = [{pipeline_mode = #tpu.pipeline_mode<synchronous>, transform_indices = @transform_0, window_bounds = array<i64: 27, 3>}, {transform_indices = @transform_1, window_bounds = array<i64: 3, 128>}, {transform_indices = @transform_2, window_bounds = array<i64: 9, 128>}, {transform_indices = @transform_3, window_bounds = array<i64: 27, 128>}]} {
    %c0 = arith.constant 0 : index
    %c0_0 = arith.constant 0 : index
    %0 = vector.load %arg2[%c0, %c0_0] : memref<3x128xf32, #tpu.memory_space<vmem>>, vector<3x128xf32>
    %c0_1 = arith.constant 0 : index
    %c0_2 = arith.constant 0 : index
    %1 = vector.load %arg3[%c0_1, %c0_2] : memref<9x128xf32, #tpu.memory_space<vmem>>, vector<9x128xf32>
    %c0_3 = arith.constant 0 : index
    %c0_4 = arith.constant 0 : index
    %2 = vector.load %arg1[%c0_3, %c0_4] : memref<27x3xf32, #tpu.memory_space<vmem>>, vector<27x3xf32>
    %cst = arith.constant 2.500000e+00 : f32
    %3 = vector.broadcast %cst : f32 to vector<3x128xf32>
    %4 = arith.mulf %3, %0 : vector<3x128xf32>
    %5 = vector.extract_strided_slice %0 {offsets = [0, 0], sizes = [1, 128], strides = [1, 1]} : vector<3x128xf32> to vector<1x128xf32>
    %6 = vector.extract_strided_slice %0 {offsets = [1, 0], sizes = [1, 128], strides = [1, 1]} : vector<3x128xf32> to vector<1x128xf32>
    %7 = vector.extract_strided_slice %0 {offsets = [2, 0], sizes = [1, 128], strides = [1, 1]} : vector<3x128xf32> to vector<1x128xf32>
    %8 = vector.extract_strided_slice %2 {offsets = [0, 0], sizes = [9, 3], strides = [1, 1]} : vector<27x3xf32> to vector<9x3xf32>
    %9 = vector.extract_strided_slice %8 {offsets = [0, 0], sizes = [9, 1], strides = [1, 1]} : vector<9x3xf32> to vector<9x1xf32>
    %10 = vector.broadcast %9 : vector<9x1xf32> to vector<9x128xf32>
    %11 = vector.broadcast %5 : vector<1x128xf32> to vector<9x128xf32>
    %12 = arith.mulf %10, %11 : vector<9x128xf32>
    %13 = vector.extract_strided_slice %8 {offsets = [0, 1], sizes = [9, 1], strides = [1, 1]} : vector<9x3xf32> to vector<9x1xf32>
    %14 = vector.broadcast %13 : vector<9x1xf32> to vector<9x128xf32>
    %15 = vector.broadcast %6 : vector<1x128xf32> to vector<9x128xf32>
    %16 = arith.mulf %14, %15 : vector<9x128xf32>
    %17 = arith.addf %12, %16 : vector<9x128xf32>
    %18 = vector.extract_strided_slice %8 {offsets = [0, 2], sizes = [9, 1], strides = [1, 1]} : vector<9x3xf32> to vector<9x1xf32>
    %19 = vector.broadcast %18 : vector<9x1xf32> to vector<9x128xf32>
    %20 = vector.broadcast %7 : vector<1x128xf32> to vector<9x128xf32>
    %21 = arith.mulf %19, %20 : vector<9x128xf32>
    %22 = arith.addf %17, %21 : vector<9x128xf32>
    %23 = vector.extract_strided_slice %4 {offsets = [0, 0], sizes = [1, 128], strides = [1, 1]} : vector<3x128xf32> to vector<1x128xf32>
    %24 = vector.broadcast %23 : vector<1x128xf32> to vector<9x128xf32>
    %25 = arith.mulf %24, %1 : vector<9x128xf32>
    %26 = arith.subf %25, %22 : vector<9x128xf32>
    %27 = vector.extract_strided_slice %2 {offsets = [9, 0], sizes = [9, 3], strides = [1, 1]} : vector<27x3xf32> to vector<9x3xf32>
    %28 = vector.extract_strided_slice %27 {offsets = [0, 0], sizes = [9, 1], strides = [1, 1]} : vector<9x3xf32> to vector<9x1xf32>
    %29 = vector.broadcast %28 : vector<9x1xf32> to vector<9x128xf32>
    %30 = vector.broadcast %5 : vector<1x128xf32> to vector<9x128xf32>
    %31 = arith.mulf %29, %30 : vector<9x128xf32>
    %32 = vector.extract_strided_slice %27 {offsets = [0, 1], sizes = [9, 1], strides = [1, 1]} : vector<9x3xf32> to vector<9x1xf32>
    %33 = vector.broadcast %32 : vector<9x1xf32> to vector<9x128xf32>
    %34 = vector.broadcast %6 : vector<1x128xf32> to vector<9x128xf32>
    %35 = arith.mulf %33, %34 : vector<9x128xf32>
    %36 = arith.addf %31, %35 : vector<9x128xf32>
    %37 = vector.extract_strided_slice %27 {offsets = [0, 2], sizes = [9, 1], strides = [1, 1]} : vector<9x3xf32> to vector<9x1xf32>
    %38 = vector.broadcast %37 : vector<9x1xf32> to vector<9x128xf32>
    %39 = vector.broadcast %7 : vector<1x128xf32> to vector<9x128xf32>
    %40 = arith.mulf %38, %39 : vector<9x128xf32>
    %41 = arith.addf %36, %40 : vector<9x128xf32>
    %42 = vector.extract_strided_slice %4 {offsets = [1, 0], sizes = [1, 128], strides = [1, 1]} : vector<3x128xf32> to vector<1x128xf32>
    %43 = vector.broadcast %42 : vector<1x128xf32> to vector<9x128xf32>
    %44 = arith.mulf %43, %1 : vector<9x128xf32>
    %45 = arith.subf %44, %41 : vector<9x128xf32>
    %46 = vector.extract_strided_slice %2 {offsets = [18, 0], sizes = [9, 3], strides = [1, 1]} : vector<27x3xf32> to vector<9x3xf32>
    %47 = vector.extract_strided_slice %46 {offsets = [0, 0], sizes = [9, 1], strides = [1, 1]} : vector<9x3xf32> to vector<9x1xf32>
    %48 = vector.broadcast %47 : vector<9x1xf32> to vector<9x128xf32>
    %49 = vector.broadcast %5 : vector<1x128xf32> to vector<9x128xf32>
    %50 = arith.mulf %48, %49 : vector<9x128xf32>
    %51 = vector.extract_strided_slice %46 {offsets = [0, 1], sizes = [9, 1], strides = [1, 1]} : vector<9x3xf32> to vector<9x1xf32>
    %52 = vector.broadcast %51 : vector<9x1xf32> to vector<9x128xf32>
    %53 = vector.broadcast %6 : vector<1x128xf32> to vector<9x128xf32>
    %54 = arith.mulf %52, %53 : vector<9x128xf32>
    %55 = arith.addf %50, %54 : vector<9x128xf32>
    %56 = vector.extract_strided_slice %46 {offsets = [0, 2], sizes = [9, 1], strides = [1, 1]} : vector<9x3xf32> to vector<9x1xf32>
    %57 = vector.broadcast %56 : vector<9x1xf32> to vector<9x128xf32>
    %58 = vector.broadcast %7 : vector<1x128xf32> to vector<9x128xf32>
    %59 = arith.mulf %57, %58 : vector<9x128xf32>
    %60 = arith.addf %55, %59 : vector<9x128xf32>
    %61 = vector.extract_strided_slice %4 {offsets = [2, 0], sizes = [1, 128], strides = [1, 1]} : vector<3x128xf32> to vector<1x128xf32>
    %62 = vector.broadcast %61 : vector<1x128xf32> to vector<9x128xf32>
    %63 = arith.mulf %62, %1 : vector<9x128xf32>
    %64 = arith.subf %63, %60 : vector<9x128xf32>
    %65 = tpu.concatenate %26, %45, %64 in 0 : vector<9x128xf32>, vector<9x128xf32>, vector<9x128xf32> -> vector<27x128xf32>
    %c0_5 = arith.constant 0 : index
    %c0_6 = arith.constant 0 : index
    %66 = vector.load %arg4[%c0_5, %c0_6] : memref<27x128xf32, #tpu.memory_space<vmem>>, vector<27x128xf32>
    tpu.vector_store %arg4[%c0_5, %c0_6], %65 {strides = array<i32>} : memref<27x128xf32, #tpu.memory_space<vmem>>, vector<27x128xf32>,
    return
  }
  func.func @transform_0(%arg0: i32) -> (i32, i32) {
    %c0_i32 = arith.constant 0 : i32
    %c0_i32_0 = arith.constant 0 : i32
    %c0_i32_1 = arith.constant 0 : i32
    return %c0_i32, %c0_i32_0 : i32, i32
  }
  func.func @transform_1(%arg0: i32) -> (i32, i32) {
    %c0_i32 = arith.constant 0 : i32
    %c0_i32_0 = arith.constant 0 : i32
    return %c0_i32, %arg0 : i32, i32
  }
  func.func @transform_2(%arg0: i32) -> (i32, i32) {
    %c0_i32 = arith.constant 0 : i32
    %c0_i32_0 = arith.constant 0 : i32
    return %c0_i32, %arg0 : i32, i32
  }
  func.func @transform_3(%arg0: i32) -> (i32, i32) {
    %c0_i32 = arith.constant 0 : i32
    %c0_i32_0 = arith.constant 0 : i32
    return %c0_i32, %arg0 : i32, i32
  }
}

</mosaic_0001>

<bundles_post_ra>
// kernel: rank_three_cartesian_harmonics.1
= control target key start
LH: loop header
LB: loop body
LE: loop exit
PB: predicated region body
PF: predicated region fallthrough
CT: control target
= control target key end

     0   :  { %v185_v0 = vmov 0   ;;  %v186_v3 = vmov 1   ;;  %v187_v5 = vmov 2   ;;  %v32_v7 = vlaneseq  ;;  %s243_s0 = inlined_call_operand.vmem [shape: f32[27,3], index: 0, kind: input, shape index: {}]   ;;  %s244_s1 = inlined_call_operand.vmem [shape: f32[3,10], index: 1, kind: input, shape index: {}]   ;;  %s245_s2 = inlined_call_operand.vmem [shape: f32[9,10], index: 2, kind: input, shape index: {}]   ;;  %s246_s3 = inlined_call_operand.vmem [shape: f32[27,10], index: 3, kind: output, shape index: {}]  }
   0x1   :  { %176 = vset.pattern.permute.xlu1 %v185_v0  ;;  %174 = vset.pattern.permute.xlu0 %v185_v0  ;;  %v19_v1 = vld [vmem:[%s243_s0 + $0x10] sm:$0xff]  ;;  %v18_v2 = vld [vmem:[%s243_s0 + $0x8] sm:$0xff]  ;;  %v20_v4 = vld [vmem:[%s243_s0 + $0x18] sm:$0x7]  ;;  %vm104_vm0 = vcmask 1046528   ;;  %vm137_vm1 = vcmask 1045504  }
   0x2   :  { %80 = vperm.xlu1 %176, %v19_v1   ;;  %29 = vperm.xlu0 %174, %v18_v2   ;;  %v17_v6 = vld [vmem:[%s243_s0] sm:$0xff]  ;;  %v33_v10 = vshrl.u32 %v32_v7, 7  ;;  %v16_v37 = vld [vmem:[%s245_s2 + $0x8] sm:$0x1]  ;;  %vm147_vm2 = vcmask 1040384   ;;  %vm155_vm3 = vcmask 1041408  }
   0x3   :  { %v14_v15 = vld [vmem:[%s244_s1] sm:$0x7] }
   0x4   :  { %v48_v11 = vsub.s32 1, %v33_v10  ;;  %v34_v12 = vsub.s32 0, %v33_v10  ;;  %v64_v17 = vsub.s32 2, %v33_v10  ;;  %v21_v22 = vmul.f32 2.5, %v14_v15  ;;  %v15_v36 = vld [vmem:[%s245_s2] sm:$0xff] }
   0x6   :  { %177 = vset.pattern.permute.xlu1 %v186_v3  ;;  %175 = vset.pattern.permute.xlu0 %v186_v3  ;;  %v49_v16 = vrot.slane %v14_v15, %v48_v11  ;;  %v35_v18 = vrot.slane %v14_v15, %v34_v12  ;;  %v65_v23 = vrot.slane %v14_v15, %v64_v17 }
   0x7   :  { %85 = vperm.xlu1 %177, %v19_v1   ;;  %43 = vperm.xlu0 %175, %v18_v2   ;;  %v99_v29 = vrot.slane %v21_v22, %v48_v11  ;;  %v73_v39 = vrot.slane %v21_v22, %v34_v12  ;;  %v133_v41 = vrot.slane %v21_v22, %v64_v17 }
   0x9   :  { %v100_v43 = vmul.f32 %v99_v29, %v15_v36  ;;  %v101_v46 = vmul.f32 %v99_v29, %v16_v37  ;;  %v75_v49 = vmul.f32 %v73_v39, %v16_v37  ;;  %v135_v51 = vmul.f32 %v133_v41, %v16_v37 }
   0xa   :  { %v134_v53 = vmul.f32 %v133_v41, %v15_v36  ;;  %v74_v10 = vmul.f32 %v73_v39, %v15_v36 }
   0xb   :  { %178 = vset.pattern.permute.xlu1 %v185_v0  ;;  %119 = vperm.xlu0 %175, %v20_v4  }
   0xc   :  { %114 = vperm.xlu1 %178, %v20_v4  }
   0xf   :  { %180 = vset.pattern.permute.xlu0 %v187_v5 }
  0x10   :  { %179 = vset.pattern.permute.xlu1 %v187_v5  ;;  %91 = vperm.xlu0 %180, %v19_v1  }
  0x11   :  { %59 = vperm.xlu1 %179, %v18_v2  }
  0x14   :  { %182 = vset.pattern.permute.xlu0 %v186_v3 }
  0x15   :  { %125 = vperm.xlu1 %179, %v20_v4   ;;  %39 = vperm.xlu0 %182, %v17_v6  }
  0x19   :  { %181 = vset.pattern.permute.xlu1 %v185_v0  ;;  %184 = vset.pattern.permute.xlu0 %v187_v5 }
  0x1a   :  { %24 = vperm.xlu1 %181, %v17_v6  }
  0x1e   :  { %183 = vset.pattern.permute.xlu1 %v187_v5 }
  0x1f   :  { %55 = vperm.xlu1 %183, %v17_v6  }
  0x7d   :  { %v81_v8 = vpop.permute.xlu1 %80  ;;  %v30_v9 = vpop.permute.xlu0 %29 }
  0x7e   :  { %v37_v24 = vmul.f32 %v35_v18, %v30_v9  ;;  %v83_v26 = vmul.f32 %v81_v8, %v35_v18 }
  0x82   :  { %v86_v13 = vpop.permute.xlu1 %85  ;;  %v44_v14 = vpop.permute.xlu0 %43 }
  0x83   :  { %v88_v21 = vmul.f32 %v86_v13, %v49_v16  ;;  %v51_v25 = vmul.f32 %v49_v16, %v44_v14 }
  0x85   :  { %v89_v28 = vadd.f32 %v88_v21, %v83_v26  ;;  %v53_v32 = vadd.f32 %v51_v25, %v37_v24 }
  0x86   :  { %v120_v19 = vpop.permute.xlu0 %119 }
  0x87   :  { %v115_v20 = vpop.permute.xlu1 %114  ;;  %v122_v34 = vmul.f32 %v120_v19, %v49_v16 }
  0x88   :  { %v117_v33 = vmul.f32 %v115_v20, %v35_v18 }
  0x8a   :  { %v123_v45 = vadd.f32 %v122_v34, %v117_v33 }
  0x8b   :  { %v92_v27 = vpop.permute.xlu0 %91 }
  0x8c   :  { %v94_v30 = vmul.f32 %v92_v27, %v65_v23  ;;  %v60_v31 = vpop.permute.xlu1 %59 }
  0x8d   :  { %v67_v35 = vmul.f32 %v65_v23, %v60_v31 }
  0x8e   :  { %v95_v38 = vadd.f32 %v94_v30, %v89_v28 }
  0x8f   :  { %v69_v40 = vadd.f32 %v67_v35, %v53_v32 }
  0x90   :  { %v106_v42 = vrot.slane %v95_v38, 1  ;;  %v126_v44 = vpop.permute.xlu1 %125  ;;  %v40_v55 = vpop.permute.xlu0 %39  ;;  %v138_v57 = vrot.slane %v95_v38, 2 }
  0x91   :  { %v105_v47 = vrot.slane %v69_v40, 1  ;;  %v128_v48 = vmul.f32 %v126_v44, %v65_v23  ;;  %v77_v60 = vsub.f32 %v75_v49, %v69_v40  ;;  %v50_v0 = vmul.f32 %v49_v16, %v40_v55 }
  0x92   :  { %v111_v56 = vsub.f32 %v101_v46, %v106_v42 }
  0x93   :  { %v107_v50 = vsel %vm104_vm0, %v105_v47, %v106_v42  ;;  %v129_v52 = vadd.f32 %v128_v48, %v123_v45 }
  0x94   :  { %v110_v54 = vsub.f32 %v100_v43, %v107_v50  ;;  %v149_v4 = vrot.slane %v111_v56, 7 }
  0x95   :  { %v139_v58 = vrot.slane %v129_v52, 2  ;;  %v25_v59 = vpop.permute.xlu1 %24 }
  0x96   :  { %v148_v61 = vrot.slane %v110_v54, 7  ;;  %v36_v1 = vmul.f32 %v35_v18, %v25_v59 }
  0x97   :  { %v140_v62 = vsel %vm137_vm1, %v138_v57, %v139_v58  ;;  %v144_v63 = vsub.f32 %v135_v51, %v139_v58 }
  0x98   :  { %v143_v2 = vsub.f32 %v134_v53, %v140_v62  ;;  %v161_v3 = vsel %vm147_vm2, %v77_v60, %v148_v61  ;;  %v150_v8 = vsel %vm147_vm2, %v148_v61, %v149_v4  ;;  %v52_v9 = vadd.f32 %v50_v0, %v36_v1 }
  0x99   :  { %v157_v5 = vrot.slane %v144_v63, 6  ;;  %164 = vst [vmem:[%s246_s3 + $0x8] sm:$0xff] %v161_v3 }
  0x9a   :  { %v156_v6 = vrot.slane %v143_v2, 6  ;;  %v56_v7 = vpop.permute.xlu1 %55 }
  0x9b   :  { %v66_v11 = vmul.f32 %v65_v23, %v56_v7 }
  0x9c   :  { %v158_v12 = vsel %vm155_vm3, %v156_v6, %v157_v5  ;;  %v162_v13 = vsel %vm155_vm3, %v150_v8, %v156_v6 }
  0x9d   :  { %165 = vst [vmem:[%s246_s3 + $0x10] sm:$0xff] %v162_v13  ;;  %166 = vst [vmem:[%s246_s3 + $0x18] sm:$0x7] %v158_v12  ;;  %v68_v14 = vadd.f32 %v66_v11, %v52_v9 }
  0x9f   :  { %v76_v15 = vsub.f32 %v74_v10, %v68_v14 }
  0xa1   :  { %163 = vst [vmem:[%s246_s3] sm:$0xff] %v76_v15 }

</bundles_post_ra>
